<compile_context>
chip_gen: v6e
topology: v6e:2x2x1
jax: 0.10.0
libtpu: 0.0.40
codegen_flags: <defaults>
</compile_context>

<pallas_src>
import functools
import math

import jax
import jax.numpy as jnp
from jax.experimental import pallas as pl
from jax.experimental.pallas import tpu as pltpu


# ---------------------------------------------------------------------------
# Helpers
# ---------------------------------------------------------------------------
def _gelu_new(x):
    # HF "gelu_new" (tanh approximation) — the act used by T5DenseGatedActDense.
    c = 0.7978845608028654  # sqrt(2/pi)
    return 0.5 * x * (1.0 + jnp.tanh(c * (x + 0.044715 * x * x * x)))


def _round_up(x, m):
    return ((x + m - 1) // m) * m


def _vmem_cap_bytes():
    try:
        return int(pltpu.get_tpu_info().vmem_capacity_bytes)
    except Exception:
        return 64 * 1024 * 1024  # conservative fallback (v7x per-TC size)


def _block_vmem_bytes(tok_tile, d_model, ff_tile, ix, iw, ox, hoist):
    """Per-step VMEM footprint (double-buffer factors included exactly once)."""
    return (2 * tok_tile * d_model * ix            # x  (double-buffered)
            + 2 * tok_tile * 4                     # gate column (f32)
            + 2 * d_model * (2 * ff_tile) * iw     # wi01 tile
            + 2 * ff_tile * d_model * iw           # wo tile
            + 2 * tok_tile * d_model * ox          # out
            + tok_tile * d_model * 4               # f32 mixture accumulator
            + (tok_tile * d_model * 4 if hoist else 0))   # per-expert f32 scratch


# ---------------------------------------------------------------------------
# Fused MoE kernel: all experts' gated FFNs + gate-weighted combine
# ---------------------------------------------------------------------------
def _moe_kernel(gate_ref, x_ref, wi01_ref, wo_ref, o_ref, acc_ref, *scratch,
                ff_tile, hoist):
    # gate_ref : (T, 1)  f32     per-token gate of the current expert
    # x_ref    : (T, d_model)    resident across the e/f reduction axes
    # wi01_ref : (d_model, 2*ff_tile)   [wi0_tile | wi1_tile] fused
    # wo_ref   : (ff_tile, d_model)
    # o_ref    : (T, d_model)    acc_ref: (T, d_model) f32 scratch
    e = pl.program_id(1)
    f = pl.program_id(2)
    n_e = pl.num_programs(1)
    n_f = pl.num_programs(2)

    @pl.when(jnp.logical_and(e == 0, f == 0))
    def _():
        acc_ref[...] = jnp.zeros_like(acc_ref)

    x = x_ref[...]
    # single fused matmul for both input projections (wide N for the MXU)
    h01 = jnp.dot(x, wi01_ref[...], preferred_element_type=jnp.float32)
    h = (_gelu_new(h01[:, :ff_tile]) * h01[:, ff_tile:]).astype(wo_ref.dtype)
    y = jnp.dot(h, wo_ref[...], preferred_element_type=jnp.float32)

    if hoist:
        # accumulate raw expert output over the d_ff tiles; apply the gate once
        eacc_ref = scratch[0]

        @pl.when(f == 0)
        def _():
            eacc_ref[...] = jnp.zeros_like(eacc_ref)

        eacc_ref[...] += y

        @pl.when(f == n_f - 1)
        def _():
            acc_ref[...] += gate_ref[...] * eacc_ref[...]
    else:
        acc_ref[...] += gate_ref[...] * y

    @pl.when(jnp.logical_and(e == n_e - 1, f == n_f - 1))
    def _():
        o_ref[...] = acc_ref[...].astype(o_ref.dtype)


# ---------------------------------------------------------------------------
# One-time weight preparation (outside jit): choose ff_tile and pre-pack
# wi0/wi1 into the fused, d_ff-tiled layout (E, n_f, d_model, 2*ff_tile).
# ---------------------------------------------------------------------------
def prepare_params(params, *, ff_tile=None, tok_tile_hint=512):
    wi0, wi1, wo = params["wi0"], params["wi1"], params["wo"]
    E, d_model, d_ff = wi0.shape
    iw = wi0.dtype.itemsize

    if ff_tile is None:
        cap = int(0.85 * _vmem_cap_bytes())
        headroom = 4 << 20
        tok = tok_tile_hint

        def fits(ft):
            hoist = (d_ff // ft) > 1
            return _block_vmem_bytes(tok, d_model, ft, iw, iw, 4, hoist) + headroom <= cap

        cands = [d_ff] + [c for c in range(d_ff - 128, 0, -128) if d_ff % c == 0]
        ff_tile = cands[-1]
        for c in cands:
            if fits(c):
                ff_tile = c
                break

    assert d_ff % ff_tile == 0, f"d_ff={d_ff} must be a multiple of ff_tile={ff_tile}"
    n_f = d_ff // ff_tile

    # (E, d_model, n_f, ff_tile) x2 -> (E, n_f, d_model, 2*ff_tile)
    wi0r = wi0.reshape(E, d_model, n_f, ff_tile)
    wi1r = wi1.reshape(E, d_model, n_f, ff_tile)
    wi01_t = jnp.transpose(jnp.concatenate([wi0r, wi1r], axis=-1), (0, 2, 1, 3))

    return {"gate_w": params["gate_w"], "wi01_t": wi01_t, "wo": wo}


# ---------------------------------------------------------------------------
# Forward
# ---------------------------------------------------------------------------
@functools.partial(jax.jit, static_argnames=("tok_tile",))
def mta_lineargate_forward(prepared, hidden_states, *, tok_tile=None):
    gate_w, wi01_t, wo = prepared["gate_w"], prepared["wi01_t"], prepared["wo"]
    E, n_f, d_model, two_ft = wi01_t.shape
    ff_tile = two_ft // 2
    d_ff = n_f * ff_tile
    B, S, dm = hidden_states.shape
    assert dm == d_model

    # --- tiny gate: cls-token matmul + softmax (plain-JAX glue, negligible) ---
    cls = hidden_states[:, 0, :].astype(jnp.float32)
    logits = cls @ gate_w.astype(jnp.float32)
    gate = jax.nn.softmax(logits, axis=-1)[:, :E]           # (B, E)

    # --- flatten (B, S) into one token axis so the token tile can be large ---
    N = B * S
    w_dtype = wi01_t.dtype
    ix = iw = jnp.dtype(w_dtype).itemsize
    ox = jnp.dtype(hidden_states.dtype).itemsize
    sub = 16 if iw == 2 else 8
    hoist = n_f > 1

    cap = int(0.85 * _vmem_cap_bytes())
    headroom = 4 << 20

    if tok_tile is None:
        tok_tile = min(512, _round_up(N, sub))
    tok_tile = max(sub, _round_up(tok_tile, sub))
    while (tok_tile > sub and
           _block_vmem_bytes(tok_tile, d_model, ff_tile, ix, iw, ox, hoist)
           + headroom > cap):
        tok_tile = max(sub, _round_up(tok_tile // 2, sub))

    N_pad = _round_up(N, tok_tile)
    n_t = N_pad // tok_tile

    x = hidden_states.reshape(N, d_model).astype(w_dtype)
    gate_tok = jnp.broadcast_to(gate.T[:, :, None], (E, B, S)).reshape(E, N)
    if N_pad != N:
        x = jnp.pad(x, ((0, N_pad - N), (0, 0)))
        gate_tok = jnp.pad(gate_tok, ((0, 0), (0, N_pad - N)))
    gate_tok = gate_tok[:, :, None]                          # (E, N_pad, 1) f32

    block_bytes = _block_vmem_bytes(tok_tile, d_model, ff_tile, ix, iw, ox, hoist)
    vmem_limit = int(min(cap, block_bytes + headroom))

    scratch = [pltpu.VMEM((tok_tile, d_model), jnp.float32)]
    if hoist:
        scratch.append(pltpu.VMEM((tok_tile, d_model), jnp.float32))

    flops = 6 * N_pad * d_model * d_ff * E
    transcendentals = N_pad * d_ff * E
    bytes_accessed = (n_t * E * 3 * d_model * d_ff * iw         # weight stream
                      + N_pad * d_model * (ix + ox)             # x + out
                      + E * N_pad * 4)                           # gate columns

    out_pad = pl.pallas_call(
        functools.partial(_moe_kernel, ff_tile=ff_tile, hoist=hoist),
        out_shape=jax.ShapeDtypeStruct((N_pad, d_model), hidden_states.dtype),
        grid=(n_t, E, n_f),
        in_specs=[
            pl.BlockSpec((None, tok_tile, 1), lambda t, e, f: (e, t, 0)),            # gate
            pl.BlockSpec((tok_tile, d_model), lambda t, e, f: (t, 0)),               # x
            pl.BlockSpec((None, None, d_model, 2 * ff_tile),
                         lambda t, e, f: (e, f, 0, 0)),                              # wi01
            pl.BlockSpec((None, ff_tile, d_model), lambda t, e, f: (e, f, 0)),       # wo
        ],
        out_specs=pl.BlockSpec((tok_tile, d_model), lambda t, e, f: (t, 0)),
        scratch_shapes=scratch,
        compiler_params=pltpu.CompilerParams(
            dimension_semantics=("parallel", "arbitrary", "arbitrary"),
            vmem_limit_bytes=vmem_limit),
        cost_estimate=pl.CostEstimate(flops=flops,
                                      transcendentals=transcendentals,
                                      bytes_accessed=bytes_accessed),
    )(gate_tok, x, wi01_t, wo)

    return out_pad[:N].reshape(B, S, d_model)


# ---------------------------------------------------------------------------
# Parameter init (deterministic, synthetic).  my_hidden_size == d_model, as the
# module implicitly requires (the gate consumes the cls hidden state directly).
# Weights pre-transposed vs torch.nn.Linear so kernels compute x @ W.
# ---------------------------------------------------------------------------
def init_params(key, d_model, d_ff, num_experts, dtype=jnp.bfloat16):
    ks = jax.random.split(key, 4)
    si = 1.0 / math.sqrt(d_model)
    so = 1.0 / math.sqrt(d_ff)
    return {
        "gate_w": jax.random.normal(ks[0], (d_model, d_model), jnp.float32) * si,
        "wi0": (jax.random.normal(ks[1], (num_experts, d_model, d_ff), jnp.float32) * si).astype(dtype),
        "wi1": (jax.random.normal(ks[2], (num_experts, d_model, d_ff), jnp.float32) * si).astype(dtype),
        "wo":  (jax.random.normal(ks[3], (num_experts, d_ff, d_model), jnp.float32) * so).astype(dtype),
    }


# ---------------------------------------------------------------------------
# Pure-JAX reference (mirrors the PyTorch forward, f32 math)
# ---------------------------------------------------------------------------
def _ref_forward(params, hidden_states):
    E = params["wi0"].shape[0]
    hs = hidden_states.astype(jnp.float32)
    cls = hs[:, 0, :]
    gate = jax.nn.softmax(cls @ params["gate_w"].astype(jnp.float32), axis=-1)[:, :E]
    out = jnp.zeros_like(hs)
    for i in range(E):
        hg = _gelu_new(hs @ params["wi0"][i].astype(jnp.float32))
        hl = hs @ params["wi1"][i].astype(jnp.float32)
        y = (hg * hl) @ params["wo"][i].astype(jnp.float32)
        out = out + gate[:, i][:, None, None] * y
    return out


if __name__ == "__main__":
    # Small shapes consistent with the module's forward.
    B, S, d_model, d_ff, num_experts = 2, 16, 128, 256, 4

    key = jax.random.PRNGKey(0)
    kx, kp = jax.random.split(key)
    hidden_states = jax.random.normal(kx, (B, S, d_model), jnp.float32)
    params = init_params(kp, d_model, d_ff, num_experts, dtype=jnp.bfloat16)

    prepared = prepare_params(params)            # one-time weight packing
    out = mta_lineargate_forward(prepared, hidden_states)
    out = jax.block_until_ready(out)

    ref = _ref_forward(params, hidden_states)
    assert out.shape == (B, S, d_model)
    rel = float(jnp.linalg.norm(out.astype(jnp.float32) - ref)
                / (jnp.linalg.norm(ref) + 1e-12))
    assert rel < 2e-2, f"mismatch vs JAX reference: rel err {rel}"

    print("KERNEL_OK")
</pallas_src>

<mosaic_0001>
module attributes {stable_mosaic.version = 11 : i64} {
  func.func @_moe_kernel(%arg0: i32, %arg1: i32, %arg2: i32, %arg3: memref<1x32x1xf32, #tpu.memory_space<vmem>>, %arg4: memref<32x128xbf16, #tpu.memory_space<vmem>>, %arg5: memref<1x1x128x512xbf16, #tpu.memory_space<vmem>>, %arg6: memref<1x256x128xbf16, #tpu.memory_space<vmem>>, %arg7: memref<32x128xf32, #tpu.memory_space<vmem>>, %arg8: memref<32x128xf32, #tpu.memory_space<vmem>>) attributes {dimension_semantics = [#tpu.dimension_semantics<parallel>, #tpu.dimension_semantics<arbitrary>, #tpu.dimension_semantics<arbitrary>], iteration_bounds = array<i64: 1, 4, 1>, scalar_prefetch = 0 : i64, scratch_operands = 1 : i64, tpu.core_type = #tpu.core_type<tc>, window_params = [{transform_indices = @transform_0, window_bounds = array<i64: 1, 32, 1>}, {transform_indices = @transform_1, window_bounds = array<i64: 32, 128>}, {transform_indices = @transform_2, window_bounds = array<i64: 1, 1, 128, 512>}, {transform_indices = @transform_3, window_bounds = array<i64: 1, 256, 128>}, {transform_indices = @transform_4, window_bounds = array<i64: 32, 128>}]} {
    %c0_i32 = arith.constant 0 : i32
    %0 = arith.cmpi eq, %arg1, %c0_i32 : i32
    %c0_i32_0 = arith.constant 0 : i32
    %1 = arith.cmpi eq, %arg2, %c0_i32_0 : i32
    %2 = arith.andi %0, %1 : i1
    %3 = arith.extui %2 : i1 to i32
    %c0_i32_1 = arith.constant 0 : i32
    %4 = arith.cmpi ne, %3, %c0_i32_1 : i32
    scf.if %4 {
      %cst_24 = arith.constant 0.000000e+00 : f32
      %41 = vector.broadcast %cst_24 : f32 to vector<32x128xf32>
      %c0_25 = arith.constant 0 : index
      %c0_26 = arith.constant 0 : index
      %42 = vector.load %arg8[%c0_25, %c0_26] : memref<32x128xf32, #tpu.memory_space<vmem>>, vector<32x128xf32>
      tpu.vector_store %arg8[%c0_25, %c0_26], %41 {strides = array<i32>} : memref<32x128xf32, #tpu.memory_space<vmem>>, vector<32x128xf32>,
    } else {
    }
    %c0 = arith.constant 0 : index
    %c0_2 = arith.constant 0 : index
    %5 = vector.load %arg4[%c0, %c0_2] : memref<32x128xbf16, #tpu.memory_space<vmem>>, vector<32x128xbf16>
    %c0_3 = arith.constant 0 : index
    %c0_4 = arith.constant 0 : index
    %c0_5 = arith.constant 0 : index
    %c0_6 = arith.constant 0 : index
    %6 = vector.load %arg5[%c0_3, %c0_4, %c0_5, %c0_6] : memref<1x1x128x512xbf16, #tpu.memory_space<vmem>>, vector<1x1x128x512xbf16>
    %7 = vector.shape_cast %6 : vector<1x1x128x512xbf16> to vector<128x512xbf16>
    %cst = arith.constant dense<0.000000e+00> : vector<32x512xf32>
    %8 = tpu.matmul %5, %7, %cst {dimension_numbers = #tpu.dot_dimension_numbers<[1], [0], [0], [1], [0, 0, 1, 1], [], []>} : vector<32x128xbf16>, vector<128x512xbf16>, vector<32x512xf32> -> vector<32x512xf32>
    %9 = vector.extract_strided_slice %8 {offsets = [0, 0], sizes = [32, 256], strides = [1, 1]} : vector<32x512xf32> to vector<32x256xf32>
    %cst_7 = arith.constant 5.000000e-01 : f32
    %10 = vector.broadcast %cst_7 : f32 to vector<32x256xf32>
    %11 = arith.mulf %10, %9 : vector<32x256xf32>
    %cst_8 = arith.constant 4.471500e-02 : f32
    %12 = vector.broadcast %cst_8 : f32 to vector<32x256xf32>
    %13 = arith.mulf %12, %9 : vector<32x256xf32>
    %14 = arith.mulf %13, %9 : vector<32x256xf32>
    %15 = arith.mulf %14, %9 : vector<32x256xf32>
    %16 = arith.addf %9, %15 : vector<32x256xf32>
    %cst_9 = arith.constant 0.797884583 : f32
    %17 = vector.broadcast %cst_9 : f32 to vector<32x256xf32>
    %18 = arith.mulf %17, %16 : vector<32x256xf32>
    %19 = math.tanh %18 : vector<32x256xf32>
    %cst_10 = arith.constant 1.000000e+00 : f32
    %20 = vector.broadcast %cst_10 : f32 to vector<32x256xf32>
    %21 = arith.addf %20, %19 : vector<32x256xf32>
    %22 = arith.mulf %11, %21 : vector<32x256xf32>
    %23 = vector.extract_strided_slice %8 {offsets = [0, 256], sizes = [32, 256], strides = [1, 1]} : vector<32x512xf32> to vector<32x256xf32>
    %24 = arith.mulf %22, %23 : vector<32x256xf32>
    %25 = arith.truncf %24 : vector<32x256xf32> to vector<32x256xbf16>
    %c0_11 = arith.constant 0 : index
    %c0_12 = arith.constant 0 : index
    %c0_13 = arith.constant 0 : index
    %26 = vector.load %arg6[%c0_11, %c0_12, %c0_13] : memref<1x256x128xbf16, #tpu.memory_space<vmem>>, vector<1x256x128xbf16>
    %27 = vector.shape_cast %26 : vector<1x256x128xbf16> to vector<256x128xbf16>
    %cst_14 = arith.constant dense<0.000000e+00> : vector<32x128xf32>
    %28 = tpu.matmul %25, %27, %cst_14 {dimension_numbers = #tpu.dot_dimension_numbers<[1], [0], [0], [1], [0, 0, 1, 1], [], []>} : vector<32x256xbf16>, vector<256x128xbf16>, vector<32x128xf32> -> vector<32x128xf32>
    %c0_15 = arith.constant 0 : index
    %c0_16 = arith.constant 0 : index
    %29 = vector.load %arg8[%c0_15, %c0_16] : memref<32x128xf32, #tpu.memory_space<vmem>>, vector<32x128xf32>
    %c0_17 = arith.constant 0 : index
    %c0_18 = arith.constant 0 : index
    %c0_19 = arith.constant 0 : index
    %30 = vector.load %arg3[%c0_17, %c0_18, %c0_19] : memref<1x32x1xf32, #tpu.memory_space<vmem>>, vector<1x32x1xf32>
    %31 = vector.shape_cast %30 : vector<1x32x1xf32> to vector<32x1xf32>
    %32 = vector.broadcast %31 : vector<32x1xf32> to vector<32x128xf32>
    %33 = arith.mulf %32, %28 : vector<32x128xf32>
    %34 = arith.addf %29, %33 : vector<32x128xf32>
    %c0_20 = arith.constant 0 : index
    %c0_21 = arith.constant 0 : index
    %35 = vector.load %arg8[%c0_20, %c0_21] : memref<32x128xf32, #tpu.memory_space<vmem>>, vector<32x128xf32>
    tpu.vector_store %arg8[%c0_20, %c0_21], %34 {strides = array<i32>} : memref<32x128xf32, #tpu.memory_space<vmem>>, vector<32x128xf32>,
    %c3_i32 = arith.constant 3 : i32
    %36 = arith.cmpi eq, %arg1, %c3_i32 : i32
    %c0_i32_22 = arith.constant 0 : i32
    %37 = arith.cmpi eq, %arg2, %c0_i32_22 : i32
    %38 = arith.andi %36, %37 : i1
    %39 = arith.extui %38 : i1 to i32
    %c0_i32_23 = arith.constant 0 : i32
    %40 = arith.cmpi ne, %39, %c0_i32_23 : i32
    scf.if %40 {
      %c0_24 = arith.constant 0 : index
      %c0_25 = arith.constant 0 : index
      %41 = vector.load %arg8[%c0_24, %c0_25] : memref<32x128xf32, #tpu.memory_space<vmem>>, vector<32x128xf32>
      %c0_26 = arith.constant 0 : index
      %c0_27 = arith.constant 0 : index
      %42 = vector.load %arg7[%c0_26, %c0_27] : memref<32x128xf32, #tpu.memory_space<vmem>>, vector<32x128xf32>
      tpu.vector_store %arg7[%c0_26, %c0_27], %41 {strides = array<i32>} : memref<32x128xf32, #tpu.memory_space<vmem>>, vector<32x128xf32>,
    } else {
    }
    return
  }
  func.func @transform_0(%arg0: i32, %arg1: i32, %arg2: i32) -> (i32, i32, i32) {
    %c0_i32 = arith.constant 0 : i32
    %c0_i32_0 = arith.constant 0 : i32
    return %arg1, %arg0, %c0_i32 : i32, i32, i32
  }
  func.func @transform_1(%arg0: i32, %arg1: i32, %arg2: i32) -> (i32, i32) {
    %c0_i32 = arith.constant 0 : i32
    %c0_i32_0 = arith.constant 0 : i32
    return %arg0, %c0_i32 : i32, i32
  }
  func.func @transform_2(%arg0: i32, %arg1: i32, %arg2: i32) -> (i32, i32, i32, i32) {
    %c0_i32 = arith.constant 0 : i32
    %c0_i32_0 = arith.constant 0 : i32
    %c0_i32_1 = arith.constant 0 : i32
    return %arg1, %arg2, %c0_i32, %c0_i32_0 : i32, i32, i32, i32
  }
  func.func @transform_3(%arg0: i32, %arg1: i32, %arg2: i32) -> (i32, i32, i32) {
    %c0_i32 = arith.constant 0 : i32
    %c0_i32_0 = arith.constant 0 : i32
    return %arg1, %arg2, %c0_i32 : i32, i32, i32
  }
  func.func @transform_4(%arg0: i32, %arg1: i32, %arg2: i32) -> (i32, i32) {
    %c0_i32 = arith.constant 0 : i32
    %c0_i32_0 = arith.constant 0 : i32
    return %arg0, %c0_i32 : i32, i32
  }
}

</mosaic_0001>

<bundles_post_ra>
// kernel: mta_lineargate_forward.1
= control target key start
LH: loop header
LB: loop body
LE: loop exit
PB: predicated region body
PF: predicated region fallthrough
CT: control target
= control target key end

     0   :  { %9 = vsyncpa [#allocation4], 0  ;;  %s1813_s0 = inlined_call_operand.vmem [shape: f32[4,32,1], index: 0, kind: input, shape index: {}]   ;;  %s1814_s1 = inlined_call_operand.vmem [shape: bf16[32,128], index: 1, kind: input, shape index: {}]   ;;  %s1815_s2 = inlined_call_operand.hbm [shape: bf16[4,1,128,512], index: 2, kind: input, shape index: {}]   ;;  %s1816_s3 = inlined_call_operand.hbm [shape: bf16[4,256,128], index: 3, kind: input, shape index: {}]   ;;  %s1817_s4 = inlined_call_operand.hbm [shape: f32[32,128], index: 4, kind: output, shape index: {}]  }
   0x1   :  { %11 = vsyncpa [#allocation4 + $0x1], 0 }
   0x2   :  { %12 = vsyncpa [#allocation7], 0 }
   0x3   :  { %14 = vsyncpa [#allocation7 + $0x1], 0 }
   0x4   :  { %15 = vsyncpa [#allocation5], 0  ;;  %s1568_s15 = smov 0   ;;  %s1570_s16 = smov 0  }
   0x5   :  { %s1572_s17 = smov 0   ;;  %s1574_s18 = smov 0  }
   0x6   :  { %s1576_s19 = smov 0   ;;  %s1578_s20 = smov 0  }
   0x7 LB: > { %s1113_s21 = sadd.s32 4294967295, %s1530_s20   ;;  %s36_s22 = sadd.s32 1, %s1526_s19  ;;  %s1530_s20 = sphi %s1578_s20, %s21_s20   ;;  %s1526_s19 = sphi %s1576_s19, %s1827_s19   ;;  %s1522_s18 = sphi %s1574_s18, %s1826_s18   ;;  %s1518_s17 = sphi %s1572_s17, %s1825_s17   ;;  %s1514_s16 = sphi %s1570_s16, %s1824_s16   ;;  %s1510_s15 = sphi %s1568_s15, %s1823_s15  }
   0x8   : > { %p38_p0 = scmp.ge.s32.totalorder %s36_s22, 4  ;;  %s103_s23 = sadd.s32 1, %s1518_s17 }
   0x9   : > { %p110_p1 = scmp.ne.s32.totalorder %s1518_s17, %s1514_s16  ;;  %p111_p2 = scmp.eq.s32.totalorder %s1530_s20, 0 }
   0xa   : > { %s1829_s22 = smov (%p38_p0, %s36_s22), 0  ;;  %p116_p4 = scmp.ne.s32.totalorder %s1514_s16, %s1510_s15 }
   0xb   : > { %p1604_p3 = por %p111_p2, %p110_p1  ;;  %s98_s25 = ssub.s32 %s1526_s19, %s1829_s22 }
   0xc   : > { %p117_p5 = scmp.eq.s32.totalorder %s1113_s21, 0  ;;  %p101_p6 = scmp.eq.s32.totalorder %s98_s25, 0 }
   0xd   : > { %p1248_p8 = scmp.lt.s32.totalorder %s1530_s20, 4  ;;  %s1622_s28 = sand.u32 1, %s1518_s17  }
   0xe   : > { %p1613_p7 = por %p117_p5, %p116_p4  ;;  %s1184_s29 = sshll.u32 %s1526_s19, 12 }
   0xf   : > { %s1619_s27 = scalar_select %p101_p6, %s1518_s17, %s103_s23  }
  0x10   : > { %s1117_s30 = sshll.u32 %s1622_s28, 8  ;;  %s228_s7 = scalar_lea.hbm %s1815_s2, %s1184_s29 }
  0x11   : > { %s220_s8 = scalar_lea.vmem [#allocation3], %s1117_s30  ;;  %p1631_p9 = pnand %p1248_p8, %p1604_p3 }
  0x12   : > { %s229_s9 = sshll.u32 %s220_s8, 4  ;;  %s217_s11 = scalar_lea.sflag [#allocation4], %s1622_s28  ;;  %s230_s9 = int_to_ptr.vmem [resolvable:$true] %s229_s9 }
  0x13   : > { %p1394_p10 = pneg %p1631_p9  ;;  %s1405_s12 = scalar_lea.vmem %s230_s9, 4096 }
  0x14   : > { %p1406_p11 = scmp.ne.s32.totalorder %s230_s9, %s1405_s12  ;;  %s1532_s13 = smov [#allocation3]  }
  0x15   : > { %s1410_s14 = sshll.u32 %s1532_s13, 4  ;;  %s1411_s14 = int_to_ptr.vmem [resolvable:$false] %s1410_s14 }
  0x16   : > { %p1408_p12 = pnand %p1406_p11, %p1394_p10  ;;  %s1412_s15 = scalar_lea.vmem %s1411_s14, 8192 }
  0x17   : > { %p1413_p0 = scmp.lt.s32.totalorder %s230_s9, %s1411_s14  ;;  %p1414_p1 = scmp.lt.s32.totalorder %s1412_s15, %s1405_s12 }
  0x18   : > { %p1409_p13 = pneg %p1408_p12 }
  0x19   : > { %p1415_p2 = por %p1414_p1, %p1413_p0 }
  0x1b   : > { %p1416_p3 = pnand %p1415_p2, %p1409_p13 }
  0x1d   : > { %1419 = shalt.err (!%p1416_p3)
}
  0x1e   : > { %s1533_s23 = smov 256   ;;  %s1534_s24 = smov 16  }
  0x1f   : > { %1244 = dma.hbm_to_vmem [thread:$0]  (!%p1631_p9), %s228_s7, 4096, %s230_s9, %s217_s11, %s1533_s23, %s1533_s23, %s1534_s24  }
  0x20   : > { %p1123_p4 = scmp.ge.s32.totalorder %s1530_s20, 1  ;;  %p260_p5 = scmp.lt.s32.totalorder %s1530_s20, 5 }
  0x21   : > { %s1120_s25 = sshll.u32 %s1622_s28, 7  ;;  %s1185_s30 = sshll.u32 %s1526_s19, 11 }
  0x22   : > { %p1646_p6 = pnand %p1123_p4, %p260_p5  ;;  %s243_s5 = scalar_lea.vmem [#allocation6], %s1120_s25 }
  0x23   : > { %s252_s6 = sshll.u32 %s243_s5, 4  ;;  %s251_s13 = scalar_lea.hbm %s1816_s3, %s1185_s30  ;;  %s253_s6 = int_to_ptr.vmem [resolvable:$true] %s252_s6 }
  0x24   : > { %s240_s14 = scalar_lea.sflag [#allocation7], %s1622_s28  ;;  %s1433_s15 = scalar_lea.vmem %s253_s6, 2048 }
  0x25   : > { %p1434_p8 = scmp.ne.s32.totalorder %s253_s6, %s1433_s15  ;;  %s1535_s7 = smov [#allocation6]  }
  0x26   : > { %s1438_s9 = sshll.u32 %s1535_s7, 4  ;;  %s1439_s9 = int_to_ptr.vmem [resolvable:$false] %s1438_s9 }
  0x27   : > { %p1436_p11 = pnand %p1434_p8, %p1394_p10  ;;  %s1440_s11 = scalar_lea.vmem %s1439_s9, 4096 }
  0x28   : > { %p1441_p13 = scmp.lt.s32.totalorder %s253_s6, %s1439_s9  ;;  %p1442_p0 = scmp.lt.s32.totalorder %s1440_s11, %s1433_s15 }
  0x29   : > { %p1437_p12 = pneg %p1436_p11 }
  0x2a   : > { %p1443_p1 = por %p1442_p0, %p1441_p13 }
  0x2c   : > { %p1444_p2 = pnand %p1443_p1, %p1437_p12 }
  0x2e   : > { %1447 = shalt.err (!%p1444_p2)
}
  0x2f   : > { %s1536_s23 = smov 64   ;;  %s1537_s24 = smov 4  }
  0x30   : > { %1247 = dma.hbm_to_vmem [thread:$0]  (!%p1631_p9), %s251_s13, 2048, %s253_s6, %s240_s14, %s1536_s23, %s1536_s23, %s1537_s24  }
  0x31   : > { %264 = sbr.rel (%p1646_p6) target bundleno = 570 (0x23a), region = 36  ;;  %s266_s28 = sand.u32 (!%p1646_p6), 1, %s1514_s16  }
  0x32   : > { %s1124_s25 = sshll.u32 (!%p1646_p6), %s266_s28, 8  ;;  %s267_s30 = scalar_lea.sflag (!%p1646_p6), [#allocation4], %s266_s28 }
  0x33   : > { %s1663_s5 = scalar_lea.vmem (!%p1646_p6), [#allocation3], %s1124_s25 }
  0x36   : > { %1497 = dma.done.wait (%p1613_p7), %s267_s30, 4096  }
  0x37   : > { %1499 = vsyncadd (%p1613_p7), %s267_s30, 4294963200  ;;  %s1125_s8 = sshll.u32 %s266_s28, 7  ;;  %s276_s12 = scalar_lea.sflag [#allocation7], %s266_s28 }
  0x38   : > { %s1669_s10 = scalar_lea.vmem [#allocation6], %s1125_s8 }
  0x39   : > { %1501 = dma.done.wait (%p1613_p7), %s276_s12, 2048  }
  0x3a   : > { %1503 = vsyncadd (%p1613_p7), %s276_s12, 4294965248  ;;  %p319_p9 = scmp.lt.s32.totalorder %s1522_s18, 3  ;;  %p337_p10 = scmp.eq.s32.totalorder %s1522_s18, 0 }
  0x3b   : > { %v1538_v0 = vmov (%p337_p10), 0.0  }
  0x3c   : > { %s320_s29 = scalar_select %p319_p9, %s1522_s18, 3  ;;  %343 = vst [vmem:[#allocation2 + $0x10] sm:$0xff] (%p337_p10), %v1538_v0  ;;  %344 = vst [vmem:[#allocation2] sm:$0xff] (%p337_p10), %v1538_v0 }
  0x3d   : > { %342 = sbr.rel (!%p337_p10) target bundleno = 66 (0x42), region = 48  ;;  %345 = vst [vmem:[#allocation2 + $0x18] sm:$0xff] (%p337_p10), %v1538_v0  ;;  %346 = vst [vmem:[#allocation2 + $0x8] sm:$0xff] (%p337_p10), %v1538_v0 }
  0x3e   : > { %s1186_s6 = sshll.u32 %s320_s29, 5 }
  0x3f   : > { %s1681_s15 = scalar_lea.vmem %s1813_s0, %s1186_s6 }
  0x42 PF: > { %v1310_v1 = vld [vmem:[%s1663_s5 + $0xe4] ss:$16 sps:$4 sm:$0xff]   ;;  %v1312_v2 = vld [vmem:[%s1663_s5 + $0xe0] ss:$16 sps:$4 sm:$0xff]   ;;  %v1539_v3 = vmov 0   ;;  %v1350_v35 = vld [vmem:[%s1814_s1 + $0x8] sm:$0xff]  }
  0x43   : > { %587 = vmatprep.mubr.bf16.mxu0 %v1539_v3  ;;  %640 = vmatprep.mubr.bf16.mxu1 %v1539_v3  ;;  %v1313_v4 = vld [vmem:[%s1663_s5 + $0xc4] ss:$16 sps:$4 sm:$0xff]   ;;  %v1315_v5 = vld [vmem:[%s1663_s5 + $0xc0] ss:$16 sps:$4 sm:$0xff]   ;;  %v1328_v9 = vld [vmem:[%s1663_s5 + $0xec] ss:$16 sps:$4 sm:$0xff]  }
  0x44   : > { %555 = vmatprep.subr.bf16.mxu0 %v1310_v1  ;;  %1308 = vset.pattern.permute.xlu0 %v1539_v3  ;;  %v1316_v6 = vld [vmem:[%s1663_s5 + $0xa4] ss:$16 sps:$4 sm:$0xff]   ;;  %v1318_v7 = vld [vmem:[%s1663_s5 + $0xa0] ss:$16 sps:$4 sm:$0xff]   ;;  %v1330_v10 = vld [vmem:[%s1663_s5 + $0xe8] ss:$16 sps:$4 sm:$0xff]  }
  0x45   : > { %556 = vmatpush1.bf16.msra.mxu0 %v1312_v2  ;;  %1309 = vset.pattern.permute.xlu1 %v1539_v3  ;;  %v1319_v8 = vld [vmem:[%s1663_s5 + $0x84] ss:$16 sps:$4 sm:$0xff]   ;;  %v1321_v11 = vld [vmem:[%s1663_s5 + $0x80] ss:$16 sps:$4 sm:$0xff]   ;;  %v1334_v12 = vld [vmem:[%s1663_s5 + $0xcc] ss:$16 sps:$4 sm:$0xff]  }
  0x46   : > { %557 = vmatprep.subr.bf16.mxu0 %v1313_v4  ;;  %608 = vmatprep.subr.bf16.mxu1 %v1328_v9  ;;  %v1336_v13 = vld [vmem:[%s1663_s5 + $0xc8] ss:$16 sps:$4 sm:$0xff]   ;;  %v1322_v14 = vld [vmem:[%s1663_s5 + $0x64] ss:$16 sps:$4 sm:$0xff]   ;;  %v1324_v15 = vld [vmem:[%s1663_s5 + $0x60] ss:$16 sps:$4 sm:$0xff]  }
  0x47   : > { %609 = vmatpush1.bf16.msra.mxu1 %v1330_v10  ;;  %v1340_v16 = vld [vmem:[%s1663_s5 + $0xac] ss:$16 sps:$4 sm:$0xff]   ;;  %v1342_v17 = vld [vmem:[%s1663_s5 + $0xa8] ss:$16 sps:$4 sm:$0xff]   ;;  %v1325_v18 = vld [vmem:[%s1663_s5 + $0x44] ss:$16 sps:$4 sm:$0xff]  }
  0x48   : > { %610 = vmatprep.subr.bf16.mxu1 %v1334_v12  ;;  %v1344_v19 = vld [vmem:[%s1663_s5 + $0x8c] ss:$16 sps:$4 sm:$0xff]   ;;  %v1327_v20 = vld [vmem:[%s1663_s5 + $0x40] ss:$16 sps:$4 sm:$0xff]   ;;  %v1346_v21 = vld [vmem:[%s1663_s5 + $0x88] ss:$16 sps:$4 sm:$0xff]  }
  0x49   : > { %558 = vmatpush1.bf16.msra.mxu0 %v1315_v5  ;;  %v1331_v22 = vld [vmem:[%s1663_s5 + $0x24] ss:$16 sps:$4 sm:$0xff]   ;;  %v1347_v23 = vld [vmem:[%s1663_s5 + $0x6c] ss:$16 sps:$4 sm:$0xff]   ;;  %v1333_v24 = vld [vmem:[%s1663_s5 + $0x20] ss:$16 sps:$4 sm:$0xff]  }
  0x4a   : > { %559 = vmatprep.subr.bf16.mxu0 %v1316_v6  ;;  %v1337_v25 = vld [vmem:[%s1663_s5 + $0x4] ss:$16 sps:$4 sm:$0xff]   ;;  %v1349_v26 = vld [vmem:[%s1663_s5 + $0x68] ss:$16 sps:$4 sm:$0xff]   ;;  %v1351_v27 = vld [vmem:[%s1663_s5 + $0x4c] ss:$16 sps:$4 sm:$0xff]  }
  0x4b   : > { %611 = vmatpush1.bf16.msra.mxu1 %v1336_v13  ;;  %v1339_v28 = vld [vmem:[%s1663_s5] ss:$16 sps:$4 sm:$0xff]   ;;  %v1353_v29 = vld [vmem:[%s1663_s5 + $0x48] ss:$16 sps:$4 sm:$0xff]   ;;  %v1354_v30 = vld [vmem:[%s1663_s5 + $0x2c] ss:$16 sps:$4 sm:$0xff]  }
  0x4c   : > { %612 = vmatprep.subr.bf16.mxu1 %v1340_v16  ;;  %v1343_v31 = vld [vmem:[%s1814_s1] sm:$0xff]   ;;  %v1356_v32 = vld [vmem:[%s1663_s5 + $0x28] ss:$16 sps:$4 sm:$0xff]   ;;  %v1357_v33 = vld [vmem:[%s1663_s5 + $0xc] ss:$16 sps:$4 sm:$0xff]   ;;  %p962_p7 = scmp.eq.s32.totalorder %s1522_s18, 3 }
  0x4d   : > { %560 = vmatpush1.bf16.msra.mxu0 %v1318_v7  ;;  %v1359_v34 = vld [vmem:[%s1663_s5 + $0x8] ss:$16 sps:$4 sm:$0xff]   ;;  %v1362_v38 = vld [vmem:[%s1669_s10 + $0x70] sm:$0xff]   ;;  %v1366_v42 = vld [vmem:[%s1669_s10 + $0x60] sm:$0xff]  }
  0x4e   : > { %561 = vmatprep.subr.bf16.mxu0 %v1319_v8  ;;  %v1360_v36 = vld [vmem:[%s1669_s10 + $0x78] sm:$0xff]   ;;  %v1363_v39 = vld [vmem:[%s1669_s10 + $0x30] sm:$0xff]   ;;  %v1364_v40 = vld [vmem:[%s1669_s10 + $0x68] sm:$0xff]  }
  0x4f   : > { %613 = vmatpush1.bf16.msra.mxu1 %v1342_v17  ;;  %v1361_v37 = vld [vmem:[%s1669_s10 + $0x38] sm:$0xff]   ;;  %v1365_v41 = vld [vmem:[%s1669_s10 + $0x28] sm:$0xff]   ;;  %v1367_v43 = vld [vmem:[%s1669_s10 + $0x20] sm:$0xff]  }
  0x50   : > { %614 = vmatprep.subr.bf16.mxu1 %v1344_v19  ;;  %v1368_v44 = vld [vmem:[%s1669_s10 + $0x58] sm:$0xff]   ;;  %v1370_v46 = vld [vmem:[%s1669_s10 + $0x50] sm:$0xff]   ;;  %v1372_v48 = vld [vmem:[%s1669_s10 + $0x48] sm:$0xff]  }
  0x51   : > { %562 = vmatpush1.bf16.msra.mxu0 %v1321_v11  ;;  %v1369_v45 = vld [vmem:[%s1669_s10 + $0x18] sm:$0xff]   ;;  %v1371_v47 = vld [vmem:[%s1669_s10 + $0x10] sm:$0xff]   ;;  %v1373_v49 = vld [vmem:[%s1669_s10 + $0x8] sm:$0xff]  }
  0x52   : > { %563 = vmatprep.subr.bf16.mxu0 %v1322_v14  ;;  %v1374_v50 = vld [vmem:[%s1669_s10 + $0x40] sm:$0xff]   ;;  %v928_v53 = vld [vmem:[%s1681_s15 + $0x10] sm:$0xff]  ;;  %v927_v54 = vld [vmem:[%s1681_s15 + $0x8] sm:$0xff] }
  0x53   : > { %615 = vmatpush1.bf16.msra.mxu1 %v1346_v21  ;;  %v1375_v51 = vld [vmem:[%s1669_s10] sm:$0xff]   ;;  %942 = vperm.xlu1 %1309, %v928_v53   ;;  %v929_v55 = vld [vmem:[%s1681_s15 + $0x18] sm:$0xff] }
  0x54   : > { %616 = vmatprep.subr.bf16.mxu1 %v1347_v23  ;;  %v926_v52 = vld [vmem:[%s1681_s15] sm:$0xff] }
  0x55   : > { %564 = vmatpush1.bf16.msra.mxu0 %v1324_v15  ;;  %932 = vperm.xlu0 %1308, %v926_v52  }
  0x56   : > { %565 = vmatprep.subr.bf16.mxu0 %v1325_v18 }
  0x57   : > { %617 = vmatpush1.bf16.msra.mxu1 %v1349_v26  ;;  %947 = vperm.xlu1 %1309, %v929_v55  }
  0x58   : > { %618 = vmatprep.subr.bf16.mxu1 %v1351_v27 }
  0x59   : > { %566 = vmatpush1.bf16.msra.mxu0 %v1327_v20  ;;  %937 = vperm.xlu0 %1308, %v927_v54  }
  0x5a   : > { %567 = vmatprep.subr.bf16.mxu0 %v1331_v22 }
  0x5b   : > { %619 = vmatpush1.bf16.msra.mxu1 %v1353_v29 }
  0x5c   : > { %620 = vmatprep.subr.bf16.mxu1 %v1354_v30 }
  0x5d   : > { %568 = vmatpush1.bf16.msra.mxu0 %v1333_v24 }
  0x5e   : > { %569 = vmatprep.subr.bf16.mxu0 %v1337_v25 }
  0x5f   : > { %621 = vmatpush1.bf16.msra.mxu1 %v1356_v32 }
  0x60   : > { %622 = vmatprep.subr.bf16.mxu1 %v1357_v33 }
  0x61   : > { %570 = vmatpush1.bf16.msra.mxu0 %v1339_v28 }
  0x62   : > { %1189 = vmatprep.subr.bf16.mxu0 %v1360_v36 }
  0x63   : > { %623 = vmatpush1.bf16.msra.mxu1 %v1359_v34 }
  0x64   : > { %588 = vmatmul.mubr.bf16.vlgmr.msra.gmra.mxu0 %v1343_v31  ;;  %1217 = vmatprep.subr.bf16.mxu1 %v1360_v36 }
  0x65   : > { %597 = vmatprep.mubr.bf16.mxu0 %v1539_v3  ;;  %1190 = vmatpush3.bf16.msra.mxu0 %v1361_v37 }
  0x66   : > { %641 = vmatmul.mubr.bf16.vlgmr.msra.gmra.mxu1 %v1343_v31  ;;  %1191 = vmatprep.subr.bf16.mxu0 %v1362_v38 }
  0x67   : > { %650 = vmatprep.mubr.bf16.mxu1 %v1539_v3  ;;  %1225 = vmatpush3.bf16.msra.mxu1 %v1361_v37 }
  0x68   : > { %1218 = vmatprep.subr.bf16.mxu1 %v1362_v38 }
  0x69   : > { %1192 = vmatpush3.bf16.msra.mxu0 %v1363_v39 }
  0x6a   : > { %1193 = vmatprep.subr.bf16.mxu0 %v1364_v40 }
  0x6b   : > { %1226 = vmatpush3.bf16.msra.mxu1 %v1363_v39 }
  0x6c   : > { %598 = vmatmul.mubr.bf16.gmra.mxu0 %v1350_v35  ;;  %1219 = vmatprep.subr.bf16.mxu1 %v1364_v40 }
  0x6d   : > { %1194 = vmatpush3.bf16.msra.mxu0 %v1365_v41 }
  0x6e   : > { %651 = vmatmul.mubr.bf16.gmra.mxu1 %v1350_v35  ;;  %1195 = vmatprep.subr.bf16.mxu0 %v1366_v42 }
  0x6f   : > { %1227 = vmatpush3.bf16.msra.mxu1 %v1365_v41 }
  0x70   : > { %1220 = vmatprep.subr.bf16.mxu1 %v1366_v42 }
  0x71   : > { %1196 = vmatpush3.bf16.msra.mxu0 %v1367_v43 }
  0x72   : > { %1197 = vmatprep.subr.bf16.mxu0 %v1368_v44 }
  0x73   : > { %1228 = vmatpush3.bf16.msra.mxu1 %v1367_v43 }
  0x74   : > { %1221 = vmatprep.subr.bf16.mxu1 %v1368_v44 }
  0x75   : > { %1198 = vmatpush3.bf16.msra.mxu0 %v1369_v45 }
  0x76   : > { %1199 = vmatprep.subr.bf16.mxu0 %v1370_v46 }
  0x77   : > { %1229 = vmatpush3.bf16.msra.mxu1 %v1369_v45 }
  0x78   : > { %1222 = vmatprep.subr.bf16.mxu1 %v1370_v46 }
  0x79   : > { %1200 = vmatpush3.bf16.msra.mxu0 %v1371_v47 }
  0x7a   : > { %1201 = vmatprep.subr.bf16.mxu0 %v1372_v48 }
  0x7b   : > { %1230 = vmatpush3.bf16.msra.mxu1 %v1371_v47 }
  0x7c   : > { %1223 = vmatprep.subr.bf16.mxu1 %v1372_v48 }
  0x7d   : > { %1202 = vmatpush3.bf16.msra.mxu0 %v1373_v49 }
  0x7e   : > { %1203 = vmatprep.subr.bf16.mxu0 %v1374_v50 }
  0x7f   : > { %1231 = vmatpush3.bf16.msra.mxu1 %v1373_v49 }
  0x80   : > { %1224 = vmatprep.subr.bf16.mxu1 %v1374_v50 }
  0x81   : > { %1204 = vmatpush3.bf16.msra.mxu0 %v1375_v51 }
  0x83   : > { %1232 = vmatpush3.bf16.msra.mxu1 %v1375_v51 }
 0x124   : > { %v1747_v56 = vpop.f32.mrf.mxu0 }
 0x125   : > { %v669_v57 = vmul.f32 0.044715, %v1747_v56  ;;  %v661_v54 = vmul.f32 0.5, %v1747_v56 }
 0x126   : > { %v591_v58 = vpop.f32.mrf.mxu0  ;;  %v642_v24 = vpop.f32.mrf.mxu1 }
 0x127   : > { %v677_v59 = vmul.f32 %v669_v57, %v1747_v56  ;;  %v670_v60 = vmul.f32 0.044715, %v591_v58  ;;  %v662_v49 = vmul.f32 0.5, %v591_v58 }
 0x128   : > { %v593_v61 = vpop.f32.mrf.mxu0  ;;  %v644_v35 = vpop.f32.mrf.mxu1 }
 0x129   : > { %v685_v62 = vmul.f32 %v677_v59, %v1747_v56  ;;  %v678_v63 = vmul.f32 %v670_v60, %v591_v58  ;;  %v671_v0 = vmul.f32 0.044715, %v593_v61  ;;  %v663_v50 = vmul.f32 0.5, %v593_v61 }
 0x12a   : > { %v1752_v1 = vpop.f32.mrf.mxu0  ;;  %v646_v41 = vpop.f32.mrf.mxu1 }
 0x12b   : > { %v693_v2 = vadd.f32 %v685_v62, %v1747_v56  ;;  %v686_v3 = vmul.f32 %v678_v63, %v591_v58  ;;  %v679_v4 = vmul.f32 %v671_v0, %v593_v61  ;;  %v672_v5 = vmul.f32 0.044715, %v1752_v1 }
 0x12c   : > { %v1756_v6 = vpop.f32.mrf.mxu0  ;;  %v648_v44 = vpop.f32.mrf.mxu1  ;;  %v664_v59 = vmul.f32 0.5, %v1752_v1 }
 0x12d   : > { %v694_v7 = vadd.f32 %v686_v3, %v591_v58  ;;  %v687_v8 = vmul.f32 %v679_v4, %v593_v61  ;;  %v680_v9 = vmul.f32 %v672_v5, %v1752_v1  ;;  %v673_v10 = vmul.f32 0.044715, %v1756_v6 }
 0x12e   : > { %v1760_v11 = vpop.f32.mrf.mxu0  ;;  %v701_v12 = vmul.f32 0.7978846, %v693_v2  ;;  %v652_v52 = vpop.f32.mrf.mxu1 }
 0x12f   : > { %v695_v13 = vadd.f32 %v687_v8, %v593_v61  ;;  %v688_v14 = vmul.f32 %v680_v9, %v1752_v1  ;;  %v681_v15 = vmul.f32 %v673_v10, %v1756_v6  ;;  %v674_v16 = vmul.f32 0.044715, %v1760_v11 }
 0x130   : > { %v603_v17 = vpop.f32.mrf.mxu0  ;;  %1376 = vtanh.f32 %v701_v12  ;;  %v702_v18 = vmul.f32 0.7978846, %v694_v7  ;;  %v654_v3 = vpop.f32.mrf.mxu1  ;;  %v666_v10 = vmul.f32 0.5, %v1760_v11 }
 0x131   : > { %v696_v19 = vadd.f32 %v688_v14, %v1752_v1  ;;  %v689_v20 = vmul.f32 %v681_v15, %v1756_v6  ;;  %v682_v21 = vmul.f32 %v674_v16, %v1760_v11  ;;  %v675_v22 = vmul.f32 0.044715, %v603_v17 }
 0x132   : > { %v605_v23 = vpop.f32.mrf.mxu0  ;;  %1378 = vtanh.f32 %v702_v18  ;;  %v703_v25 = vmul.f32 0.7978846, %v695_v13  ;;  %v667_v56 = vmul.f32 0.5, %v603_v17  ;;  %v665_v1 = vmul.f32 0.5, %v1756_v6  ;;  %v656_v15 = vpop.f32.mrf.mxu1 }
 0x133   : > { %v697_v26 = vadd.f32 %v689_v20, %v1756_v6  ;;  %v690_v27 = vmul.f32 %v682_v21, %v1760_v11  ;;  %v683_v28 = vmul.f32 %v675_v22, %v603_v17  ;;  %v676_v29 = vmul.f32 0.044715, %v605_v23 }
 0x134   : > { %1380 = vtanh.f32 %v703_v25  ;;  %v704_v30 = vmul.f32 0.7978846, %v696_v19  ;;  %v668_v16 = vmul.f32 0.5, %v605_v23 }
 0x135   : > { %v698_v31 = vadd.f32 %v690_v27, %v1760_v11  ;;  %v691_v32 = vmul.f32 %v683_v28, %v603_v17  ;;  %v684_v33 = vmul.f32 %v676_v29, %v605_v23  ;;  %v705_v34 = vmul.f32 0.7978846, %v697_v26  ;;  %v658_v26 = vpop.f32.mrf.mxu1 }
 0x136   : > { %1382 = vtanh.f32 %v704_v30 }
 0x137   : > { %v699_v36 = vadd.f32 %v691_v32, %v603_v17  ;;  %v692_v37 = vmul.f32 %v684_v33, %v605_v23  ;;  %v706_v38 = vmul.f32 0.7978846, %v698_v31  ;;  %1384 = vtanh.f32 %v705_v34  ;;  %v922_v32 = vld [vmem:[#allocation2 + $0x10] sm:$0xff] }
 0x139   : > { %v700_v39 = vadd.f32 %v692_v37, %v605_v23  ;;  %1386 = vtanh.f32 %v706_v38  ;;  %v707_v40 = vmul.f32 0.7978846, %v699_v36  ;;  %v933_v23 = vpop.permute.xlu0 %932 }
 0x13b   : > { %1388 = vtanh.f32 %v707_v40  ;;  %v708_v42 = vmul.f32 0.7978846, %v700_v39  ;;  %v923_v40 = vld [vmem:[#allocation2] sm:$0xff] }
 0x13d   : > { %v1377_v43 = vpop.eup %1376  ;;  %1390 = vtanh.f32 %v708_v42  ;;  %v938_v36 = vpop.permute.xlu0 %937 }
 0x13e   : > { %v717_v48 = vadd.f32 1.0, %v1377_v43 }
 0x13f   : > { %v1379_v45 = vpop.eup %1378 }
 0x140   : > { %v718_v46 = vadd.f32 1.0, %v1379_v45  ;;  %v725_v63 = vmul.f32 %v717_v48, %v661_v54 }
 0x141   : > { %v1381_v47 = vpop.eup %1380 }
 0x142   : > { %v719_v51 = vadd.f32 1.0, %v1381_v47  ;;  %v726_v55 = vmul.f32 %v718_v46, %v662_v49  ;;  %v733_v9 = vmul.f32 %v725_v63, %v642_v24  ;;  %v924_v46 = vld [vmem:[#allocation2 + $0x18] sm:$0xff] }
 0x143   : > { %v1383_v53 = vpop.eup %1382 }
 0x144   : > { %v727_v57 = vmul.f32 %v719_v51, %v663_v50  ;;  %v720_v60 = vadd.f32 1.0, %v1383_v53  ;;  %v1385_v62 = vpop.eup %1384  ;;  %v734_v58 = vmul.f32 %v726_v55, %v644_v35  ;;  %v925_v53 = vld [vmem:[#allocation2 + $0x8] sm:$0xff] }
 0x145   : > { %v721_v8 = vadd.f32 1.0, %v1385_v62 }
 0x146   : > { %v1387_v0 = vpop.eup %1386  ;;  %v728_v2 = vmul.f32 %v720_v60, %v664_v59  ;;  %v735_v4 = vmul.f32 %v727_v57, %v646_v41  ;;  %v943_v41 = vpop.permute.xlu1 %942 }
 0x147   : > { %v722_v5 = vadd.f32 1.0, %v1387_v0  ;;  %v729_v22 = vmul.f32 %v721_v8, %v665_v1 }
 0x148   : > { %v1389_v7 = vpop.eup %1388  ;;  %v736_v61 = vmul.f32 %v728_v2, %v648_v44  ;;  %v741_v18 = vpack.c.bf16 %v735_v4, %v733_v9 }
 0x149   : > { %v723_v12 = vadd.f32 1.0, %v1389_v7  ;;  %v730_v19 = vmul.f32 %v722_v5, %v666_v10  ;;  %v737_v27 = vmul.f32 %v729_v22, %v652_v52 }
 0x14a   : > { %v1391_v13 = vpop.eup %1390  ;;  %v742_v14 = vpack.c.bf16 %v736_v61, %v734_v58  ;;  %v948_v52 = vpop.permute.xlu1 %947 }
 0x14b   : > { %v731_v20 = vmul.f32 %v723_v12, %v667_v56  ;;  %v724_v21 = vadd.f32 1.0, %v1391_v13  ;;  %v738_v11 = vmul.f32 %v730_v19, %v654_v3 }
 0x14c   : > { %905 = vmatprep.mubr.bf16.mxu0 %v742_v14 }
 0x14d   : > { %v732_v25 = vmul.f32 %v724_v21, %v668_v16  ;;  %906 = vmatmul.mubr.bf16.vlgmr.msra.gmra.mxu0 %v741_v18  ;;  %v739_v24 = vmul.f32 %v731_v20, %v656_v15 }
 0x14f   : > { %v740_v17 = vmul.f32 %v732_v25, %v658_v26  ;;  %v743_v29 = vpack.c.bf16 %v739_v24, %v737_v27 }
 0x151   : > { %v744_v28 = vpack.c.bf16 %v740_v17, %v738_v11 }
 0x153   : > { %913 = vmatprep.mubr.bf16.mxu1 %v744_v28 }
 0x154   : > { %914 = vmatmul.mubr.bf16.vlgmr.msra.gmra.mxu1 %v743_v29 }
 0x20d   : > { %v1205_v6 = vpop.f32.mrf.mxu0 }
 0x20f   : > { %v1206_v30 = vpop.f32.mrf.mxu0 }
 0x210   : > { %v1207_v31 = vadd.f32 %v1206_v30, %v1205_v6 }
 0x211   : > { %v1208_v33 = vpop.f32.mrf.mxu0 }
 0x212   : > { %v950_v34 = vmul.f32 %v1207_v31, %v933_v23 }
 0x213   : > { %v1209_v35 = vpop.f32.mrf.mxu0 }
 0x214   : > { %v954_v37 = vadd.f32 %v950_v34, %v922_v32  ;;  %v1210_v38 = vadd.f32 %v1209_v35, %v1208_v33  ;;  %v1211_v39 = vpop.f32.mrf.mxu1 }
 0x216   : > { %958 = vst [vmem:[#allocation2 + $0x10] sm:$0xff] %v954_v37  ;;  %v951_v42 = vmul.f32 %v1210_v38, %v938_v36  ;;  %v1212_v43 = vpop.f32.mrf.mxu1 }
 0x217   : > { %v1213_v44 = vadd.f32 %v1212_v43, %v1211_v39 }
 0x218   : > { %v955_v45 = vadd.f32 %v951_v42, %v923_v40  ;;  %v1214_v47 = vpop.f32.mrf.mxu1 }
 0x219   : > { %v952_v48 = vmul.f32 %v1213_v44, %v943_v41 }
 0x21a   : > { %959 = vst [vmem:[#allocation2] sm:$0xff] %v955_v45  ;;  %v1215_v49 = vpop.f32.mrf.mxu1 }
 0x21b   : > { %v956_v50 = vadd.f32 %v952_v48, %v924_v46  ;;  %v1216_v51 = vadd.f32 %v1215_v49, %v1214_v47 }
 0x21d   : > { %960 = vst [vmem:[#allocation2 + $0x18] sm:$0xff] %v956_v50  ;;  %v953_v54 = vmul.f32 %v1216_v51, %v948_v52  ;;  %966 = sbr.rel (!%p962_p7) target bundleno = 554 (0x22a), region = 52  ;;  %v967_v57 = vld [vmem:[#allocation2 + $0x10] sm:$0xff] (%p962_p7) }
 0x21e   : > { %971 = vst [vmem:[#allocation8] sm:$0xff] (%p962_p7), %v967_v57 }
 0x21f   : > { %v957_v55 = vadd.f32 %v953_v54, %v925_v53 }
 0x221   : > { %961 = vst [vmem:[#allocation2 + $0x8] sm:$0xff] %v957_v55  ;;  %v968_v59 = vld [vmem:[#allocation2] sm:$0xff] (%p962_p7) }
 0x222   : > { %972 = vst [vmem:[#allocation8 + $0x8] sm:$0xff] %v968_v59 }
 0x224   : > { %v969_v60 = vld [vmem:[#allocation2 + $0x18] sm:$0xff] }
 0x225   : > { %973 = vst [vmem:[#allocation8 + $0x10] sm:$0xff] %v969_v60 }
 0x228   : > { %v970_v62 = vld [vmem:[#allocation2 + $0x8] sm:$0xff] }
 0x229   : > { %974 = vst [vmem:[#allocation8 + $0x18] sm:$0xff] %v970_v62 }
 0x22a PF: > { %p1780_p3 = scmp.eq.s32.totalorder %s1113_s21, 3  ;;  %s1540_s24 = smov [#allocation8]  }
 0x22b   : > { %s984_s28 = sshll.u32 %s1540_s24, 4  ;;  %s985_s28 = int_to_ptr.vmem [resolvable:$true] %s984_s28 }
 0x22c   : > { %s1448_s18 = scalar_lea.vmem %s985_s28, 512  ;;  %p1455_p8 = scmp.lt.s32.totalorder %s985_s28, %s985_s28 }
 0x22d   : > { %p1449_p4 = scmp.ne.s32.totalorder %s985_s28, %s1448_s18  ;;  %p1456_p11 = scmp.lt.s32.totalorder %s1448_s18, %s1448_s18 }
 0x22f   : > { %p1450_p5 = pnand %p1449_p4, %p1780_p3  ;;  %p1457_p12 = por %p1456_p11, %p1455_p8 }
 0x231   : > { %p1451_p6 = pneg %p1450_p5 }
 0x233   : > { %p1458_p13 = pnand %p1457_p12, %p1451_p6 }
 0x235   : > { %1461 = shalt.err (!%p1458_p13)
}
 0x236   : > { %s1541_s25 = smov 128   ;;  %s1542_s21 = smov 8  }
 0x237   : > { %1238 = dma.vmem_to_hbm [thread:$0]  (%p1780_p3), %s985_s28, 512, %s1817_s4, [#allocation5], %s1541_s25, %s1541_s25, %s1542_s21  }
 0x238   : > { %1505 = dma.done.wait (%p1780_p3), [#allocation5], 512  }
 0x239   : > { %1507 = vsyncadd (%p1780_p3), [#allocation5], 4294966784 }
 0x23a PF: > { %s21_s20 = sadd.s32 1, %s1530_s20   ;;  %s1823_s15 = smov %s1514_s16 }
 0x23b   : > { %p18_p0 = scmp.ge.s32.totalorder %s21_s20, 6   ;;  %s1824_s16 = smov %s1518_s17 }
 0x23c   : > { %s1825_s17 = smov %s1619_s27  ;;  %s1826_s18 = smov %s1526_s19 }
 0x23d   : > { %s1827_s19 = smov %s1829_s22  ;;  %20 = sbr.rel (!%p18_p0) target bundleno = 7 (0x7), region = 101 }
 0x242   :  { %1000 = vsyncpa [#allocation4], 1 }
 0x243   :  { %1002 = vsyncpa [#allocation4 + $0x1], 1 }
 0x244   :  { %1003 = vsyncpa [#allocation7], 1 }
 0x245   :  { %1005 = vsyncpa [#allocation7 + $0x1], 1 }
 0x246   :  { %1006 = vsyncpa [#allocation5], 1 }
 0x247   :  { %1008 = vsyncpa [#allocation5 + $0x1], 1 }

</bundles_post_ra>
